<compile_context>
chip_gen: v5e
topology: v5e:2x2
jax: 0.10.0
libtpu: 0.0.40
codegen_flags: <defaults>
</compile_context>

<pallas_src>
import math

import jax
import jax.numpy as jnp
from jax.experimental import pallas as pl
from jax.experimental.pallas import tpu as pltpu


def _round_up(x, m):
    return ((x + m - 1) // m) * m


# ------------------------------ Pallas kernel -------------------------------

def _patch_embed_kernel(p_ref, w_ref, b_ref, o_ref):
    # p_ref: (TM, Kp)  bf16 im2col patch rows (one row tile, batch-flattened)
    # w_ref: (Kp, Ep)  bf16 projection weights, K = Cin*P*P (c-major, i, j)
    # b_ref: (1,  Ep)  f32 conv bias
    # o_ref: (TM, Ep)  f32 patch embeddings, final (B*N, E) row layout
    acc = jnp.dot(p_ref[...], w_ref[...], preferred_element_type=jnp.float32)
    o_ref[...] = (acc + b_ref[...]).astype(o_ref.dtype)


# ------------------------------ tile sizing ----------------------------------

def _pick_tile_rows(rows, k_pad, e_pad):
    """Largest row tile that fits VMEM, preferring one that divides `rows`."""
    try:
        budget = int(0.70 * pltpu.get_tpu_info().vmem_capacity_bytes)
    except Exception:
        budget = 40 * 1024 * 1024          # safe on v5e / v6e / v7x
    budget -= 2 * 1024 * 1024              # headroom for compiler scratch

    if rows <= 8:
        return rows, budget

    # double-buffered bf16 patch rows + double-buffered f32 output rows
    per_row = 2 * k_pad * 2 + 2 * e_pad * 4
    # single-buffered weight + bias (pl.Buffered(1))
    fixed = k_pad * e_pad * 2 + e_pad * 4

    cap = max(8, (budget - fixed) // per_row)
    cap = min(cap, 1024, rows)
    cap = max(8, (cap // 8) * 8)

    tm = cap
    c = cap
    while c >= 8:                          # prefer a tile that divides rows
        if rows % c == 0:
            tm = c
            break
        c -= 8
    return tm, budget


# ------------------------------ Pallas wrapper -------------------------------

def patch_embed_forward(x_nchw, weight_oihw, bias, patch_size):
    """PatchEmbed.forward.

    x_nchw     : (B, Cin, img, img) float32 (PyTorch NCHW convention)
    weight_oihw: (E, Cin, P, P)     Conv2d weight
    bias       : (E,)               Conv2d bias
    Returns (tokens, H, W) with tokens: (B, H*W, E) float32.
    """
    B, C, Himg, Wimg = x_nchw.shape
    P = patch_size
    H, W = Himg // P, Wimg // P
    E = weight_oihw.shape[0]
    K = C * P * P
    M = H * W
    rows = B * M

    k_pad = _round_up(K, 128)
    e_pad = _round_up(E, 128)

    # stride == kernel_size: conv drops any trailing pixels, mirror that.
    x_nchw = x_nchw[:, :, :H * P, :W * P]

    # im2col with zero duplication (non-overlapping patches): pure layout op.
    # patches[b*M + h*W + w, c*P*P + i*P + j] = x[b, c, h*P+i, w*P+j]
    patches = x_nchw.reshape(B, C, H, P, W, P)
    patches = patches.transpose(0, 2, 4, 1, 3, 5).reshape(rows, K)
    patches = patches.astype(jnp.bfloat16)
    if k_pad != K:
        patches = jnp.pad(patches, ((0, 0), (0, k_pad - K)))

    # weight row order matches the patch-vector order (c, i, j).
    w_mat = weight_oihw.reshape(E, K).T.astype(jnp.bfloat16)     # (K, E)
    if k_pad != K or e_pad != E:
        w_mat = jnp.pad(w_mat, ((0, k_pad - K), (0, e_pad - E)))
    b_row = bias.reshape(1, E).astype(jnp.float32)
    if e_pad != E:
        b_row = jnp.pad(b_row, ((0, 0), (0, e_pad - E)))

    TM, vmem_budget = _pick_tile_rows(rows, k_pad, e_pad)
    grid = (pl.cdiv(rows, TM),)

    cost = pl.CostEstimate(
        flops=2 * rows * K * E,
        transcendentals=0,
        bytes_accessed=(rows * k_pad * 2        # bf16 patches
                        + k_pad * e_pad * 2     # bf16 weights
                        + e_pad * 4             # f32 bias
                        + rows * e_pad * 4))    # f32 output

    out_flat = pl.pallas_call(
        _patch_embed_kernel,
        out_shape=jax.ShapeDtypeStruct((rows, e_pad), jnp.float32),
        grid=grid,
        in_specs=[
            pl.BlockSpec((TM, k_pad), lambda m: (m, 0)),
            pl.BlockSpec((k_pad, e_pad), lambda m: (0, 0),
                         pipeline_mode=pl.Buffered(1)),
            pl.BlockSpec((1, e_pad), lambda m: (0, 0),
                         pipeline_mode=pl.Buffered(1)),
        ],
        out_specs=pl.BlockSpec((TM, e_pad), lambda m: (m, 0)),
        compiler_params=pltpu.CompilerParams(
            dimension_semantics=("parallel",),
            allow_input_fusion=[True, False, False],
            vmem_limit_bytes=int(vmem_budget)),
        cost_estimate=cost,
    )(patches, w_mat, b_row)

    tokens = out_flat[:, :E].reshape(B, M, E)
    return tokens, H, W


# ------------------------- deterministic parameters --------------------------

def init_params(key, in_chans, embed_dim, patch_size):
    k1, k2 = jax.random.split(key)
    fan_in = in_chans * patch_size * patch_size
    bound = 1.0 / math.sqrt(fan_in)
    return dict(
        w=jax.random.uniform(k1, (embed_dim, in_chans, patch_size, patch_size),
                             jnp.float32, -bound, bound),
        b=jax.random.uniform(k2, (embed_dim,), jnp.float32, -bound, bound),
    )


# --------------------------- pure-JAX reference ------------------------------

def reference_forward(x_nchw, weight_oihw, bias, patch_size):
    P = patch_size
    y = jax.lax.conv_general_dilated(
        x_nchw, weight_oihw, window_strides=(P, P), padding="VALID",
        dimension_numbers=("NCHW", "OIHW", "NCHW"))
    y = y + bias[None, :, None, None]
    B, E, H, W = y.shape
    tokens = y.reshape(B, E, H * W).transpose(0, 2, 1)   # flatten(2).transpose(1,2)
    return tokens, H, W


def _check(tokens, H, W, ref_tokens, rh, rw, tag):
    assert (H, W) == (rh, rw), tag
    # bf16 operands + f32 accumulation vs. the f32 conv reference.
    if not jnp.allclose(tokens, ref_tokens, atol=2e-2, rtol=2e-2):
        err = float(jnp.max(jnp.abs(tokens - ref_tokens)))
        raise AssertionError(f"{tag}: Pallas PatchEmbed mismatch, max err {err}")


if __name__ == "__main__":
    key = jax.random.PRNGKey(0)
    kx, kp, kx2, kp2 = jax.random.split(key, 4)

    # Primary test: lane-dense embed_dim (multiple of 128), module-default
    # in_chans=3 / patch_size=4.
    B, IN_CHANS, IMG, PATCH, EMBED = 2, 3, 16, 4, 128
    x = jax.random.normal(kx, (B, IN_CHANS, IMG, IMG), dtype=jnp.float32)
    params = init_params(kp, IN_CHANS, EMBED, PATCH)

    tokens, H, W = patch_embed_forward(x, params["w"], params["b"], PATCH)
    tokens = jax.block_until_ready(tokens)
    assert tokens.shape == (B, (IMG // PATCH) ** 2, EMBED)
    ref_tokens, rh, rw = reference_forward(x, params["w"], params["b"], PATCH)
    _check(tokens, H, W, ref_tokens, rh, rw, "primary")

    # Secondary test: module-default embed_dim=64 (< 128) exercises the
    # E-padding + slice path and the tiny-row-count tile path.
    B2, C2, IMG2, P2, E2 = 1, 3, 8, 4, 64
    x2 = jax.random.normal(kx2, (B2, C2, IMG2, IMG2), dtype=jnp.float32)
    params2 = init_params(kp2, C2, E2, P2)

    tokens2, H2, W2 = patch_embed_forward(x2, params2["w"], params2["b"], P2)
    tokens2 = jax.block_until_ready(tokens2)
    assert tokens2.shape == (B2, (IMG2 // P2) ** 2, E2)
    ref2, rh2, rw2 = reference_forward(x2, params2["w"], params2["b"], P2)
    _check(tokens2, H2, W2, ref2, rh2, rw2, "secondary")

    print("KERNEL_OK")
</pallas_src>

<mosaic_0001>
module attributes {stable_mosaic.version = 11 : i64} {
  func.func @_patch_embed_kernel(%arg0: i32, %arg1: memref<32x128xbf16, #tpu.memory_space<vmem>>, %arg2: memref<128x128xbf16, #tpu.memory_space<vmem>>, %arg3: memref<1x128xf32, #tpu.memory_space<vmem>>, %arg4: memref<32x128xf32, #tpu.memory_space<vmem>>) attributes {dimension_semantics = [#tpu.dimension_semantics<parallel>], iteration_bounds = array<i64: 1>, scalar_prefetch = 0 : i64, scratch_operands = 0 : i64, tpu.core_type = #tpu.core_type<tc>, window_params = [{transform_indices = @transform_0, window_bounds = array<i64: 32, 128>}, {pipeline_mode = #tpu.pipeline_mode<synchronous>, transform_indices = @transform_1, window_bounds = array<i64: 128, 128>}, {pipeline_mode = #tpu.pipeline_mode<synchronous>, transform_indices = @transform_2, window_bounds = array<i64: 1, 128>}, {transform_indices = @transform_3, window_bounds = array<i64: 32, 128>}]} {
    %c0 = arith.constant 0 : index
    %c0_0 = arith.constant 0 : index
    %0 = vector.load %arg1[%c0, %c0_0] : memref<32x128xbf16, #tpu.memory_space<vmem>>, vector<32x128xbf16>
    %c0_1 = arith.constant 0 : index
    %c0_2 = arith.constant 0 : index
    %1 = vector.load %arg2[%c0_1, %c0_2] : memref<128x128xbf16, #tpu.memory_space<vmem>>, vector<128x128xbf16>
    %cst = arith.constant dense<0.000000e+00> : vector<32x128xf32>
    %2 = tpu.matmul %0, %1, %cst {dimension_numbers = #tpu.dot_dimension_numbers<[1], [0], [0], [1], [0, 0, 1, 1], [], []>} : vector<32x128xbf16>, vector<128x128xbf16>, vector<32x128xf32> -> vector<32x128xf32>
    %c0_3 = arith.constant 0 : index
    %c0_4 = arith.constant 0 : index
    %3 = vector.load %arg3[%c0_3, %c0_4] : memref<1x128xf32, #tpu.memory_space<vmem>>, vector<1x128xf32>
    %4 = vector.broadcast %3 : vector<1x128xf32> to vector<32x128xf32>
    %5 = arith.addf %2, %4 : vector<32x128xf32>
    %c0_5 = arith.constant 0 : index
    %c0_6 = arith.constant 0 : index
    %6 = vector.load %arg4[%c0_5, %c0_6] : memref<32x128xf32, #tpu.memory_space<vmem>>, vector<32x128xf32>
    tpu.vector_store %arg4[%c0_5, %c0_6], %5 {strides = array<i32>} : memref<32x128xf32, #tpu.memory_space<vmem>>, vector<32x128xf32>,
    return
  }
  func.func @transform_0(%arg0: i32) -> (i32, i32) {
    %c0_i32 = arith.constant 0 : i32
    %c0_i32_0 = arith.constant 0 : i32
    return %arg0, %c0_i32 : i32, i32
  }
  func.func @transform_1(%arg0: i32) -> (i32, i32) {
    %c0_i32 = arith.constant 0 : i32
    %c0_i32_0 = arith.constant 0 : i32
    %c0_i32_1 = arith.constant 0 : i32
    return %c0_i32, %c0_i32_0 : i32, i32
  }
  func.func @transform_2(%arg0: i32) -> (i32, i32) {
    %c0_i32 = arith.constant 0 : i32
    %c0_i32_0 = arith.constant 0 : i32
    %c0_i32_1 = arith.constant 0 : i32
    return %c0_i32, %c0_i32_0 : i32, i32
  }
  func.func @transform_3(%arg0: i32) -> (i32, i32) {
    %c0_i32 = arith.constant 0 : i32
    %c0_i32_0 = arith.constant 0 : i32
    return %arg0, %c0_i32 : i32, i32
  }
}

</mosaic_0001>

<bundles_post_ra>
// kernel: tpu_custom_call.1
= control target key start
LH: loop header
LB: loop body
LE: loop exit
PB: predicated region body
PF: predicated region fallthrough
CT: control target
= control target key end

     0   :  { %8 = vsyncpa [#allocation3], 0  ;;  %s357_s0 = inlined_call_operand.hbm [shape: bf16[32,128], index: 0, kind: input, shape index: {}]   ;;  %s358_s1 = inlined_call_operand.hbm [shape: bf16[128,128], index: 1, kind: input, shape index: {}]   ;;  %s359_s2 = inlined_call_operand.vmem [shape: f32[1,128], index: 2, kind: input, shape index: {}]   ;;  %s360_s3 = inlined_call_operand.hbm [shape: f32[32,128], index: 3, kind: output, shape index: {}]  }
   0x1   :  { %9 = vsyncpa [#allocation6], 0 }
   0x2   :  { %10 = vsyncpa [#allocation4], 0  ;;  %s15_s14 = sshll.u32 %s357_s0, 4  ;;  %s318_s15 = smov [#allocation2]   ;;  %s16_s14 = int_to_ptr.hbm [resolvable:$true] %s15_s14 }
   0x3   :  { %s17_s16 = sshll.u32 %s318_s15, 4  ;;  %s28_s19 = sshll.u32 %s358_s1, 4  ;;  %s18_s16 = int_to_ptr.vmem [resolvable:$true] %s17_s16  ;;  %s29_s19 = int_to_ptr.hbm [resolvable:$true] %s28_s19 }
   0x4   :  { %s319_s20 = smov 64   ;;  %s320_s21 = smov 4  }
   0x5   :  { %23 = dma.hbm_to_vmem [thread:$0]  %s16_s14, 256, %s18_s16, [#allocation3], %s319_s20, %s319_s20, %s320_s21  }
   0x6   :  { %s321_s22 = smov [#allocation5]  }
   0x7   :  { %s30_s23 = sshll.u32 %s321_s22, 4  ;;  %s31_s23 = int_to_ptr.vmem [resolvable:$true] %s30_s23 }
   0x8   :  { %36 = dma.hbm_to_vmem [thread:$0]  %s29_s19, 1024, %s31_s23, [#allocation6], %s319_s20, %s319_s20, %s320_s21  }
   0x9   :  { %312 = dma.done.wait [#allocation3], 256  }
   0xa   :  { %313 = vsyncadd [#allocation3], 4294967040 }
   0xb   :  { %314 = dma.done.wait [#allocation6], 1024  }
   0xc   :  { %315 = vsyncadd [#allocation6], 4294966272  ;;  %v223_v0 = vld [vmem:[#allocation5 + $0x38] sm:$0xff]  ;;  %v222_v1 = vld [vmem:[#allocation5 + $0x30] sm:$0xff]  ;;  %s322_s24 = smov [#allocation7]   ;;  %s160_s28 = sshll.u32 %s360_s3, 4  ;;  %s161_s28 = int_to_ptr.hbm [resolvable:$true] %s160_s28 }
   0xd   :  { %131 = vmatpush.bf16.msra.mxu0 %v223_v0  ;;  %224 = vmatpush.bf16.msra.mxu1 %v223_v0  ;;  %v221_v2 = vld [vmem:[#allocation5 + $0x28] sm:$0xff]  ;;  %v220_v3 = vld [vmem:[#allocation5 + $0x20] sm:$0xff]  ;;  %v219_v4 = vld [vmem:[#allocation5 + $0x18] sm:$0xff]  ;;  %s158_s25 = sshll.u32 %s322_s24, 4  ;;  %s324_s29 = smov 8   ;;  %s159_s25 = int_to_ptr.vmem [resolvable:$true] %s158_s25 }
   0xe   :  { %v218_v5 = vld [vmem:[#allocation5 + $0x10] sm:$0xff]  ;;  %v217_v6 = vld [vmem:[#allocation5 + $0x8] sm:$0xff]  ;;  %v216_v7 = vld [vmem:[#allocation5] sm:$0xff] }
   0xf   :  { %v214_v8 = vld [vmem:[#allocation2] sm:$0xff]  ;;  %v215_v9 = vld [vmem:[#allocation2 + $0x8] sm:$0xff] }
  0x10   :  { %v239_v10 = vld [vmem:[%s359_s2] ss:$0 sm:$0xff]  ;;  %s323_s2 = smov 128  }
  0x11   :  { %132 = vmatpush.bf16.msra.mxu0 %v222_v1  ;;  %225 = vmatpush.bf16.msra.mxu1 %v222_v1 }
  0x15   :  { %133 = vmatpush.bf16.msra.mxu0 %v221_v2  ;;  %226 = vmatpush.bf16.msra.mxu1 %v221_v2 }
  0x19   :  { %134 = vmatpush.bf16.msra.mxu0 %v220_v3  ;;  %227 = vmatpush.bf16.msra.mxu1 %v220_v3 }
  0x1d   :  { %135 = vmatpush.bf16.msra.mxu0 %v219_v4  ;;  %228 = vmatpush.bf16.msra.mxu1 %v219_v4 }
  0x21   :  { %136 = vmatpush.bf16.msra.mxu0 %v218_v5  ;;  %229 = vmatpush.bf16.msra.mxu1 %v218_v5 }
  0x25   :  { %137 = vmatpush.bf16.msra.mxu0 %v217_v6  ;;  %230 = vmatpush.bf16.msra.mxu1 %v217_v6 }
  0x29   :  { %138 = vmatpush.bf16.msra.mxu0 %v216_v7  ;;  %231 = vmatpush.bf16.msra.mxu1 %v216_v7 }
  0x2c   :  { %139 = vmatmul.bf16.vlgmr.msra.gmra.mxu0 %v214_v8  ;;  %144 = vmatmul.bf16.vlgmr.msra.gmra.mxu1 %v215_v9 }
  0xa9   :  { %v140_v11 = vpop.f32.mrf.mxu0  ;;  %v145_v12 = vpop.f32.mrf.mxu1 }
  0xaa   :  { %v141_v13 = vadd.f32 %v239_v10, %v140_v11  ;;  %v146_v14 = vadd.f32 %v239_v10, %v145_v12 }
  0xac   :  { %150 = vst [vmem:[#allocation7] sm:$0xff] %v141_v13 }
  0xad   :  { %152 = vst [vmem:[#allocation7 + $0x10] sm:$0xff] %v146_v14 }
  0xb1   :  { %v142_v15 = vpop.f32.mrf.mxu0  ;;  %v147_v16 = vpop.f32.mrf.mxu1 }
  0xb2   :  { %v143_v17 = vadd.f32 %v239_v10, %v142_v15  ;;  %v148_v18 = vadd.f32 %v239_v10, %v147_v16 }
  0xb4   :  { %151 = vst [vmem:[#allocation7 + $0x8] sm:$0xff] %v143_v17 }
  0xb5   :  { %153 = vst [vmem:[#allocation7 + $0x18] sm:$0xff] %v148_v18 }
  0xb6   :  { %166 = dma.vmem_to_hbm [thread:$0]  %s159_s25, 512, %s161_s28, [#allocation4], %s323_s2, %s323_s2, %s324_s29  }
  0xb7   :  { %316 = dma.done.wait [#allocation4], 512  }
  0xb8   :  { %317 = vsyncadd [#allocation4], 4294966784 }
  0xb9   :  { %171 = vsyncpa [#allocation3], 1 }
  0xba   :  { %172 = vsyncpa [#allocation6], 1 }
  0xbb   :  { %173 = vsyncpa [#allocation4], 1 }

</bundles_post_ra>
